<compile_context>
chip_gen: v6e
topology: v6e:2x2x1
jax: 0.10.0
libtpu: 0.0.40
codegen_flags: <defaults>
</compile_context>

<pallas_src>
import jax
import jax.numpy as jnp
from jax.experimental import pallas as pl
from jax.experimental.pallas import tpu as pltpu

NUM_CLASSES = 8
N = 16          # keypoints per sample
BS = 8          # samples processed per grid step (full sublane tile)
EPS = 1e-5

# ----- packed-parameter layout ------------------------------------------------
# f32 slab pf: (8, 256)
#   row 0 : w1[0, :64]    row 1 : w1[1, :64]    row 2 : b1[:64]
#   row 3 : b2[:128]      row 4 : b3[:256]      row 5 : b4[:128]
#   row 6 : b5[:64]       row 7 : b6 zero-padded to 128 lanes
PF_ROWS, PF_LANES = 8, 256
# bf16 slab pw: (384, 256) -- dense repack, row starts multiples of 16,
# lane starts multiples of 128:
#   rows   0:128, lanes   0:256 -> w3 (128 x 256)
#   rows 128:384, lanes   0:128 -> w4 (256 x 128)
#   rows 128:192, lanes 128:256 -> w2 ( 64 x 128)
#   rows 192:320, lanes 128:192 -> w5 (128 x  64)
#   rows 320:384, lanes 128:256 -> w6 ( 64 x NUM_CLASSES), zero-padded lanes
PW_ROWS, PW_LANES = 384, 256


def kpnet_kernel(x_ref, pf_ref, pw_ref, out_ref):
    bf16 = jnp.bfloat16
    x = x_ref[0]                                      # (BS*N, 2) = (128, 2) f32

    # --- mlp1 layer 1 (Conv1d k=1, cin=2) on the VPU: two broadcast FMAs ----
    w1r0 = pf_ref[0:1, 0:64]                          # (1, 64)
    w1r1 = pf_ref[1:2, 0:64]                          # (1, 64)
    b1 = pf_ref[2:3, 0:64]                            # (1, 64)
    h = jnp.maximum(x[:, 0:1] * w1r0 + x[:, 1:2] * w1r1 + b1, 0.0)   # (128, 64) f32

    # --- mlp1 layers 2/3: bf16 MXU matmuls, f32 accumulation ----------------
    h = jnp.maximum(
        jnp.dot(h.astype(bf16), pw_ref[128:192, 128:256],            # w2
                preferred_element_type=jnp.float32) + pf_ref[3:4, 0:128], 0.0)   # (128, 128)
    h = jnp.maximum(
        jnp.dot(h.astype(bf16), pw_ref[0:128, 0:256],                # w3
                preferred_element_type=jnp.float32) + pf_ref[4:5, 0:256], 0.0)   # (128, 256)

    # --- torch.max(x, 2)[0]: max over the N keypoints of each sample --------
    r = h.reshape(BS, N, 256)                         # 8-aligned sublane split
    r = jnp.maximum(r[:, 0:N // 2, :], r[:, N // 2:N, :])   # tile-aligned halving (VPU)
    pooled = jnp.max(r, axis=1)                       # (8, 256) f32 -- full sublane tile

    # --- mlp2 head -----------------------------------------------------------
    h = jnp.maximum(
        jnp.dot(pooled.astype(bf16), pw_ref[128:384, 0:128],         # w4
                preferred_element_type=jnp.float32) + pf_ref[5:6, 0:128], 0.0)   # (8, 128)
    h = jnp.maximum(
        jnp.dot(h.astype(bf16), pw_ref[192:320, 128:192],            # w5
                preferred_element_type=jnp.float32) + pf_ref[6:7, 0:64], 0.0)    # (8, 64)
    # final Linear: bf16 weights (lane-padded with zeros) -> lane-dense (8,128) store
    out_ref[...] = (
        jnp.dot(h.astype(bf16), pw_ref[320:384, 128:256],            # w6
                preferred_element_type=jnp.float32) + pf_ref[7:8, 0:128])        # (8, 128)


def _fold_bn(w, b, gamma, beta, mean, var, eps=EPS):
    """Fold eval-mode BatchNorm1d into a preceding (in,out) weight + bias."""
    scale = gamma / jnp.sqrt(var + eps)
    return w * scale[None, :], (b - mean) * scale + beta


def init_params(key, num_classes=NUM_CLASSES):
    dims1 = [2, 64, 128, 256]
    dims2 = [256, 128, 64, num_classes]
    keys = iter(jax.random.split(key, 64))
    params = []

    def layer_with_bn(cin, cout):
        w = jax.random.normal(next(keys), (cin, cout), jnp.float32) / jnp.sqrt(cin)
        b = 0.01 * jax.random.normal(next(keys), (cout,), jnp.float32)
        gamma = 1.0 + 0.1 * jax.random.normal(next(keys), (cout,), jnp.float32)
        beta = 0.1 * jax.random.normal(next(keys), (cout,), jnp.float32)
        mean = 0.05 * jax.random.normal(next(keys), (cout,), jnp.float32)
        var = jnp.abs(1.0 + 0.1 * jax.random.normal(next(keys), (cout,), jnp.float32))
        wf, bf = _fold_bn(w, b, gamma, beta, mean, var)
        return wf, bf.reshape(1, cout)

    # mlp1: Conv1d(k=1) + BN + ReLU, three blocks
    for i in range(3):
        wf, bf = layer_with_bn(dims1[i], dims1[i + 1])
        params += [wf, bf]
    # mlp2: two (Linear + BN + ReLU [+ Dropout]) blocks
    for i in range(2):
        wf, bf = layer_with_bn(dims2[i], dims2[i + 1])
        params += [wf, bf]
    # final Linear (no BN)
    cin, cout = dims2[2], dims2[3]
    w = jax.random.normal(next(keys), (cin, cout), jnp.float32) / jnp.sqrt(cin)
    b = 0.01 * jax.random.normal(next(keys), (cout,), jnp.float32)
    params += [w, b.reshape(1, cout)]
    return tuple(params)


def pack_params(params):
    """Pack the 12 folded arrays into two pre-padded slabs (done ONCE at init)."""
    w1, b1, w2, b2, w3, b3, w4, b4, w5, b5, w6, b6 = params
    pf = jnp.zeros((PF_ROWS, PF_LANES), jnp.float32)
    pf = pf.at[0, 0:64].set(w1[0])
    pf = pf.at[1, 0:64].set(w1[1])
    pf = pf.at[2, 0:64].set(b1.reshape(-1))
    pf = pf.at[3, 0:128].set(b2.reshape(-1))
    pf = pf.at[4, 0:256].set(b3.reshape(-1))
    pf = pf.at[5, 0:128].set(b4.reshape(-1))
    pf = pf.at[6, 0:64].set(b5.reshape(-1))
    pf = pf.at[7, 0:NUM_CLASSES].set(b6.reshape(-1))

    pw = jnp.zeros((PW_ROWS, PW_LANES), jnp.bfloat16)
    pw = pw.at[0:128, 0:256].set(w3.astype(jnp.bfloat16))
    pw = pw.at[128:384, 0:128].set(w4.astype(jnp.bfloat16))
    pw = pw.at[128:192, 128:256].set(w2.astype(jnp.bfloat16))
    pw = pw.at[192:320, 128:192].set(w5.astype(jnp.bfloat16))
    pw = pw.at[320:384, 128:128 + NUM_CLASSES].set(w6.astype(jnp.bfloat16))
    return pf, pw


def kpnet_forward(x, pf, pw):
    """x: (batch, N, 2) float32 -> (batch, NUM_CLASSES) float32."""
    batch = x.shape[0]
    m = pl.cdiv(batch, BS)                 # grid steps (BS samples each)
    padded = m * BS
    x = x.astype(jnp.float32)
    if padded != batch:
        x = jnp.pad(x, ((0, padded - batch), (0, 0), (0, 0)))
    flat = x.reshape(m, BS * N, 2)         # one contiguous (128, 2) tile per step

    out = pl.pallas_call(
        kpnet_kernel,
        out_shape=jax.ShapeDtypeStruct((padded, 128), jnp.float32),  # lane-dense padded output
        grid_spec=pltpu.PrefetchScalarGridSpec(
            num_scalar_prefetch=0,
            grid=(m,),
            in_specs=[
                pl.BlockSpec((1, BS * N, 2), lambda i: (i, 0, 0)),    # per-step activations
                pl.BlockSpec((PF_ROWS, PF_LANES), lambda i: (0, 0)),  # f32 slab: resident
                pl.BlockSpec((PW_ROWS, PW_LANES), lambda i: (0, 0)),  # bf16 slab: resident
            ],
            out_specs=pl.BlockSpec((BS, 128), lambda i: (i, 0)),
        ),
        compiler_params=pltpu.CompilerParams(
            dimension_semantics=("parallel",)),    # both TCs on v7x
    )(flat, pf, pw)
    return out[:batch, :NUM_CLASSES]


def ref_forward_f32(x, params):
    """Pure-f32 JAX reference (original module semantics, eval mode)."""
    w1, b1, w2, b2, w3, b3, w4, b4, w5, b5, w6, b6 = params
    batch = x.shape[0]
    h = x.reshape(batch * N, 2).astype(jnp.float32)
    h = jnp.maximum(h @ w1 + b1, 0.0)
    h = jnp.maximum(h @ w2 + b2, 0.0)
    h = jnp.maximum(h @ w3 + b3, 0.0)
    h = jnp.max(h.reshape(batch, N, -1), axis=1)
    h = jnp.maximum(h @ w4 + b4, 0.0)
    h = jnp.maximum(h @ w5 + b5, 0.0)
    return h @ w6 + b6


def ref_forward_mixed(x, params):
    """Pure-JAX reference using the kernel's exact mixed precision."""
    w1, b1, w2, b2, w3, b3, w4, b4, w5, b5, w6, b6 = params
    bf16 = jnp.bfloat16
    batch = x.shape[0]

    def mm(a, w):
        return jnp.dot(a.astype(bf16), w.astype(bf16),
                       preferred_element_type=jnp.float32)

    h = x.reshape(batch * N, 2).astype(jnp.float32)
    h = jnp.maximum(h @ w1 + b1, 0.0)
    h = jnp.maximum(mm(h, w2) + b2, 0.0)
    h = jnp.maximum(mm(h, w3) + b3, 0.0)
    h = jnp.max(h.reshape(batch, N, -1), axis=1)
    h = jnp.maximum(mm(h, w4) + b4, 0.0)
    h = jnp.maximum(mm(h, w5) + b5, 0.0)
    return mm(h, w6) + b6


if __name__ == "__main__":
    key = jax.random.PRNGKey(0)
    k_x, k_p = jax.random.split(key)
    batch = 16                                           # 2 grid steps of 8 samples
    x = jax.random.normal(k_x, (batch, N, 2), jnp.float32)   # (batch, keypoints, xy)
    params = init_params(k_p)
    pf, pw = pack_params(params)          # packed once, reused for every forward call

    forward = jax.jit(kpnet_forward)
    out = jax.block_until_ready(forward(x, pf, pw))
    assert out.shape == (batch, NUM_CLASSES)

    ref_mixed = ref_forward_mixed(x, params)
    ref_f32 = ref_forward_f32(x, params)
    assert jnp.allclose(out, ref_mixed, atol=1e-2, rtol=1e-2), \
        "kernel mismatch vs mixed-precision reference"
    assert jnp.allclose(out, ref_f32, atol=3e-1, rtol=1e-1), \
        "kernel drifted too far from f32 reference"
    print("KERNEL_OK")
</pallas_src>

<mosaic_0001>
module attributes {stable_mosaic.version = 11 : i64} {
  func.func @kpnet_kernel(%arg0: i32, %arg1: memref<1x128x2xf32, #tpu.memory_space<vmem>>, %arg2: memref<8x256xf32, #tpu.memory_space<vmem>>, %arg3: memref<384x256xbf16, #tpu.memory_space<vmem>>, %arg4: memref<8x128xf32, #tpu.memory_space<vmem>>) attributes {dimension_semantics = [#tpu.dimension_semantics<parallel>], iteration_bounds = array<i64: 2>, scalar_prefetch = 0 : i64, scratch_operands = 0 : i64, tpu.core_type = #tpu.core_type<tc>, window_params = [{transform_indices = @transform_0, window_bounds = array<i64: 1, 128, 2>}, {pipeline_mode = #tpu.pipeline_mode<synchronous>, transform_indices = @transform_1, window_bounds = array<i64: 8, 256>}, {pipeline_mode = #tpu.pipeline_mode<synchronous>, transform_indices = @transform_2, window_bounds = array<i64: 384, 256>}, {transform_indices = @transform_3, window_bounds = array<i64: 8, 128>}]} {
    %c0 = arith.constant 0 : index
    %c0_0 = arith.constant 0 : index
    %c0_1 = arith.constant 0 : index
    %0 = vector.load %arg1[%c0, %c0_0, %c0_1] : memref<1x128x2xf32, #tpu.memory_space<vmem>>, vector<1x128x2xf32>
    %1 = vector.shape_cast %0 : vector<1x128x2xf32> to vector<128x2xf32>
    %c0_2 = arith.constant 0 : index
    %c0_3 = arith.constant 0 : index
    %2 = vector.load %arg2[%c0_2, %c0_3] : memref<8x256xf32, #tpu.memory_space<vmem>>, vector<1x64xf32>
    %c1 = arith.constant 1 : index
    %c0_4 = arith.constant 0 : index
    %3 = vector.load %arg2[%c1, %c0_4] : memref<8x256xf32, #tpu.memory_space<vmem>>, vector<1x64xf32>
    %c2 = arith.constant 2 : index
    %c0_5 = arith.constant 0 : index
    %4 = vector.load %arg2[%c2, %c0_5] : memref<8x256xf32, #tpu.memory_space<vmem>>, vector<1x64xf32>
    %5 = vector.extract_strided_slice %1 {offsets = [0, 0], sizes = [128, 1], strides = [1, 1]} : vector<128x2xf32> to vector<128x1xf32>
    %6 = vector.broadcast %5 : vector<128x1xf32> to vector<128x64xf32>
    %7 = vector.broadcast %2 : vector<1x64xf32> to vector<128x64xf32>
    %8 = arith.mulf %6, %7 : vector<128x64xf32>
    %9 = vector.extract_strided_slice %1 {offsets = [0, 1], sizes = [128, 1], strides = [1, 1]} : vector<128x2xf32> to vector<128x1xf32>
    %10 = vector.broadcast %9 : vector<128x1xf32> to vector<128x64xf32>
    %11 = vector.broadcast %3 : vector<1x64xf32> to vector<128x64xf32>
    %12 = arith.mulf %10, %11 : vector<128x64xf32>
    %13 = arith.addf %8, %12 : vector<128x64xf32>
    %14 = vector.broadcast %4 : vector<1x64xf32> to vector<128x64xf32>
    %15 = arith.addf %13, %14 : vector<128x64xf32>
    %cst = arith.constant 0.000000e+00 : f32
    %16 = vector.broadcast %cst : f32 to vector<128x64xf32>
    %17 = arith.maximumf %15, %16 : vector<128x64xf32>
    %18 = arith.truncf %17 : vector<128x64xf32> to vector<128x64xbf16>
    %c128 = arith.constant 128 : index
    %c128_6 = arith.constant 128 : index
    %19 = vector.load %arg3[%c128, %c128_6] : memref<384x256xbf16, #tpu.memory_space<vmem>>, vector<64x128xbf16>
    %cst_7 = arith.constant dense<0.000000e+00> : vector<128x128xf32>
    %20 = tpu.matmul %18, %19, %cst_7 {dimension_numbers = #tpu.dot_dimension_numbers<[1], [0], [0], [1], [0, 0, 1, 1], [], []>} : vector<128x64xbf16>, vector<64x128xbf16>, vector<128x128xf32> -> vector<128x128xf32>
    %c3 = arith.constant 3 : index
    %c0_8 = arith.constant 0 : index
    %21 = vector.load %arg2[%c3, %c0_8] : memref<8x256xf32, #tpu.memory_space<vmem>>, vector<1x128xf32>
    %22 = vector.broadcast %21 : vector<1x128xf32> to vector<128x128xf32>
    %23 = arith.addf %20, %22 : vector<128x128xf32>
    %cst_9 = arith.constant 0.000000e+00 : f32
    %24 = vector.broadcast %cst_9 : f32 to vector<128x128xf32>
    %25 = arith.maximumf %23, %24 : vector<128x128xf32>
    %26 = arith.truncf %25 : vector<128x128xf32> to vector<128x128xbf16>
    %c0_10 = arith.constant 0 : index
    %c0_11 = arith.constant 0 : index
    %27 = vector.load %arg3[%c0_10, %c0_11] : memref<384x256xbf16, #tpu.memory_space<vmem>>, vector<128x256xbf16>
    %cst_12 = arith.constant dense<0.000000e+00> : vector<128x256xf32>
    %28 = tpu.matmul %26, %27, %cst_12 {dimension_numbers = #tpu.dot_dimension_numbers<[1], [0], [0], [1], [0, 0, 1, 1], [], []>} : vector<128x128xbf16>, vector<128x256xbf16>, vector<128x256xf32> -> vector<128x256xf32>
    %c4 = arith.constant 4 : index
    %c0_13 = arith.constant 0 : index
    %29 = vector.load %arg2[%c4, %c0_13] : memref<8x256xf32, #tpu.memory_space<vmem>>, vector<1x256xf32>
    %30 = vector.broadcast %29 : vector<1x256xf32> to vector<128x256xf32>
    %31 = arith.addf %28, %30 : vector<128x256xf32>
    %cst_14 = arith.constant 0.000000e+00 : f32
    %32 = vector.broadcast %cst_14 : f32 to vector<128x256xf32>
    %33 = arith.maximumf %31, %32 : vector<128x256xf32>
    %34 = vector.shape_cast %33 : vector<128x256xf32> to vector<8x16x256xf32>
    %35 = vector.extract_strided_slice %34 {offsets = [0, 0, 0], sizes = [8, 8, 256], strides = [1, 1, 1]} : vector<8x16x256xf32> to vector<8x8x256xf32>
    %36 = vector.extract_strided_slice %34 {offsets = [0, 8, 0], sizes = [8, 8, 256], strides = [1, 1, 1]} : vector<8x16x256xf32> to vector<8x8x256xf32>
    %37 = arith.maximumf %35, %36 : vector<8x8x256xf32>
    %cst_15 = arith.constant dense<0xFF800000> : vector<8x256xf32>
    %38 = vector.multi_reduction <maximumf>, %37, %cst_15 [1] : vector<8x8x256xf32> to vector<8x256xf32>
    %39 = arith.truncf %38 : vector<8x256xf32> to vector<8x256xbf16>
    %c128_16 = arith.constant 128 : index
    %c0_17 = arith.constant 0 : index
    %40 = vector.load %arg3[%c128_16, %c0_17] : memref<384x256xbf16, #tpu.memory_space<vmem>>, vector<256x128xbf16>
    %cst_18 = arith.constant dense<0.000000e+00> : vector<8x128xf32>
    %41 = tpu.matmul %39, %40, %cst_18 {dimension_numbers = #tpu.dot_dimension_numbers<[1], [0], [0], [1], [0, 0, 1, 1], [], []>} : vector<8x256xbf16>, vector<256x128xbf16>, vector<8x128xf32> -> vector<8x128xf32>
    %c5 = arith.constant 5 : index
    %c0_19 = arith.constant 0 : index
    %42 = vector.load %arg2[%c5, %c0_19] : memref<8x256xf32, #tpu.memory_space<vmem>>, vector<1x128xf32>
    %43 = vector.broadcast %42 : vector<1x128xf32> to vector<8x128xf32>
    %44 = arith.addf %41, %43 : vector<8x128xf32>
    %cst_20 = arith.constant 0.000000e+00 : f32
    %45 = vector.broadcast %cst_20 : f32 to vector<8x128xf32>
    %46 = arith.maximumf %44, %45 : vector<8x128xf32>
    %47 = arith.truncf %46 : vector<8x128xf32> to vector<8x128xbf16>
    %c192 = arith.constant 192 : index
    %c128_21 = arith.constant 128 : index
    %48 = vector.load %arg3[%c192, %c128_21] : memref<384x256xbf16, #tpu.memory_space<vmem>>, vector<128x64xbf16>
    %cst_22 = arith.constant dense<0.000000e+00> : vector<8x64xf32>
    %49 = tpu.matmul %47, %48, %cst_22 {dimension_numbers = #tpu.dot_dimension_numbers<[1], [0], [0], [1], [0, 0, 1, 1], [], []>} : vector<8x128xbf16>, vector<128x64xbf16>, vector<8x64xf32> -> vector<8x64xf32>
    %c6 = arith.constant 6 : index
    %c0_23 = arith.constant 0 : index
    %50 = vector.load %arg2[%c6, %c0_23] : memref<8x256xf32, #tpu.memory_space<vmem>>, vector<1x64xf32>
    %51 = vector.broadcast %50 : vector<1x64xf32> to vector<8x64xf32>
    %52 = arith.addf %49, %51 : vector<8x64xf32>
    %cst_24 = arith.constant 0.000000e+00 : f32
    %53 = vector.broadcast %cst_24 : f32 to vector<8x64xf32>
    %54 = arith.maximumf %52, %53 : vector<8x64xf32>
    %55 = arith.truncf %54 : vector<8x64xf32> to vector<8x64xbf16>
    %c320 = arith.constant 320 : index
    %c128_25 = arith.constant 128 : index
    %56 = vector.load %arg3[%c320, %c128_25] : memref<384x256xbf16, #tpu.memory_space<vmem>>, vector<64x128xbf16>
    %cst_26 = arith.constant dense<0.000000e+00> : vector<8x128xf32>
    %57 = tpu.matmul %55, %56, %cst_26 {dimension_numbers = #tpu.dot_dimension_numbers<[1], [0], [0], [1], [0, 0, 1, 1], [], []>} : vector<8x64xbf16>, vector<64x128xbf16>, vector<8x128xf32> -> vector<8x128xf32>
    %c7 = arith.constant 7 : index
    %c0_27 = arith.constant 0 : index
    %58 = vector.load %arg2[%c7, %c0_27] : memref<8x256xf32, #tpu.memory_space<vmem>>, vector<1x128xf32>
    %59 = vector.broadcast %58 : vector<1x128xf32> to vector<8x128xf32>
    %60 = arith.addf %57, %59 : vector<8x128xf32>
    %c0_28 = arith.constant 0 : index
    %c0_29 = arith.constant 0 : index
    %61 = vector.load %arg4[%c0_28, %c0_29] : memref<8x128xf32, #tpu.memory_space<vmem>>, vector<8x128xf32>
    tpu.vector_store %arg4[%c0_28, %c0_29], %60 {strides = array<i32>} : memref<8x128xf32, #tpu.memory_space<vmem>>, vector<8x128xf32>,
    return
  }
  func.func @transform_0(%arg0: i32) -> (i32, i32, i32) {
    %c0_i32 = arith.constant 0 : i32
    %c0_i32_0 = arith.constant 0 : i32
    %c0_i32_1 = arith.constant 0 : i32
    return %arg0, %c0_i32, %c0_i32_0 : i32, i32, i32
  }
  func.func @transform_1(%arg0: i32) -> (i32, i32) {
    %c0_i32 = arith.constant 0 : i32
    %c0_i32_0 = arith.constant 0 : i32
    %c0_i32_1 = arith.constant 0 : i32
    return %c0_i32, %c0_i32_0 : i32, i32
  }
  func.func @transform_2(%arg0: i32) -> (i32, i32) {
    %c0_i32 = arith.constant 0 : i32
    %c0_i32_0 = arith.constant 0 : i32
    %c0_i32_1 = arith.constant 0 : i32
    return %c0_i32, %c0_i32_0 : i32, i32
  }
  func.func @transform_3(%arg0: i32) -> (i32, i32) {
    %c0_i32 = arith.constant 0 : i32
    %c0_i32_0 = arith.constant 0 : i32
    return %arg0, %c0_i32 : i32, i32
  }
}

</mosaic_0001>

<bundles_post_ra>
// kernel: kpnet_forward.1
= control target key start
LH: loop header
LB: loop body
LE: loop exit
PB: predicated region body
PF: predicated region fallthrough
CT: control target
= control target key end

     0   :  { %8 = vsyncpa [#allocation3], 0  ;;  %s1816_s12 = smov 0   ;;  %s2089_s0 = inlined_call_operand.vmem [shape: f32[2,128,2], index: 0, kind: input, shape index: {}]   ;;  %s2090_s1 = inlined_call_operand.vmem [shape: f32[8,256], index: 1, kind: input, shape index: {}]   ;;  %s2091_s2 = inlined_call_operand.hbm [shape: bf16[384,256], index: 2, kind: input, shape index: {}]   ;;  %s2092_s3 = inlined_call_operand.vmem [shape: f32[16,128], index: 3, kind: output, shape index: {}]  }
   0x1 LB: > { %s1822_s13 = sadd.s32 4294967295, %s1787_s12   ;;  %p1476_p0 = scmp.ge.s32.totalorder %s1787_s12, 1  ;;  %s1787_s12 = sphi %s1816_s12, %s14_s12  }
   0x2   : > { %p113_p1 = scmp.lt.s32.totalorder %s1787_s12, 3  ;;  %s1789_s14 = smov [#allocation2]  }
   0x3   : > { %s128_s15 = sshll.u32 %s1789_s14, 4  ;;  %p1657_p3 = scmp.eq.s32.totalorder %s1822_s13, 0  ;;  %s129_s15 = int_to_ptr.vmem [resolvable:$true] %s128_s15 }
   0x4   : > { %p1826_p2 = pnand %p1476_p0, %p113_p1  ;;  %s1762_s17 = scalar_lea.vmem %s129_s15, 6144 }
   0x5   : > { %p1763_p7 = scmp.ne.s32.totalorder %s129_s15, %s1762_s17  ;;  %p1770_p10 = scmp.lt.s32.totalorder %s129_s15, %s129_s15 }
   0x6   : > { %p1653_p4 = pneg %p1826_p2  ;;  %p1771_p11 = scmp.lt.s32.totalorder %s1762_s17, %s1762_s17 }
   0x8   : > { %p1654_p5 = pnand %p1657_p3, %p1653_p4  ;;  %p1772_p12 = por %p1771_p11, %p1770_p10 }
   0xa   : > { %p1753_p6 = pneg %p1654_p5 }
   0xc   : > { %p1765_p8 = pnand %p1763_p7, %p1753_p6 }
   0xe   : > { %p1766_p9 = pneg %p1765_p8 }
  0x10   : > { %p1773_p13 = pnand %p1772_p12, %p1766_p9 }
  0x12   : > { %1776 = shalt.err (!%p1773_p13)
}
  0x13   : > { %s1790_s18 = smov 128   ;;  %s1791_s19 = smov 8  }
  0x14   : > { %1656 = dma.hbm_to_vmem [thread:$0]  (!%p1654_p5), %s2091_s2, 6144, %s129_s15, [#allocation3], %s1790_s18, %s1790_s18, %s1791_s19  }
  0x15   : > { %152 = sbr.rel (%p1826_p2) target bundleno = 1292 (0x50c), region = 32 }
  0x1a   : > { %1782 = dma.done.wait (%p1657_p3), [#allocation3], 6144  }
  0x1b   : > { %1784 = vsyncadd (%p1657_p3), [#allocation3], 4294961152  ;;  %p175_p0 = scmp.lt.s32.totalorder %s1822_s13, 1  ;;  %v1792_v0 = vmov 1   ;;  %v1793_v1 = vmov 0   ;;  %vm469_vm0 = vcmask 523264  }
  0x1c   : > { %1675 = vset.pattern.permute.xlu1 %v1792_v0  ;;  %1674 = vset.pattern.permute.xlu0 %v1793_v1  ;;  %v1695_v6 = vld [vmem:[#allocation2 + $0xb4] ss:$8 sps:$4 sm:$0xff]   ;;  %v1696_v7 = vld [vmem:[#allocation2 + $0xa4] ss:$8 sps:$4 sm:$0xff]   ;;  %v1701_v23 = vld [vmem:[#allocation2 + $0x70] ss:$8 sps:$4 sm:$0xff]  }
  0x1d   : > { %s2095_s13 = smov (!%p175_p0, %s1822_s13), 1  ;;  %756 = vmatprep.mubr.bf16.mxu1 %v1793_v1  ;;  %1593 = vmatprep.subr.bf16.mxu0 %v1695_v6  ;;  %v1697_v8 = vld [vmem:[#allocation2 + $0x94] ss:$8 sps:$4 sm:$0xff]   ;;  %v1698_v10 = vld [vmem:[#allocation2 + $0x84] ss:$8 sps:$4 sm:$0xff]   ;;  %vm1062_vm1 = vcmask 1041409  }
  0x1e   : > { %s1544_s22 = sshll.u32 %s2095_s13, 7  ;;  %1594 = vmatpush3.bf16.msra.mxu0 %v1695_v6  ;;  %v1699_v22 = vld [vmem:[#allocation2 + $0x74] ss:$8 sps:$4 sm:$0xff]   ;;  %v1702_v24 = vld [vmem:[#allocation2 + $0x64] ss:$8 sps:$4 sm:$0xff]   ;;  %vm1064_vm2 = vcmask 1042434  }
  0x1f   : > { %s1855_s25 = scalar_lea.vmem %s2089_s0, %s1544_s22  ;;  %1595 = vmatprep.subr.bf16.mxu0 %v1696_v7  ;;  %724 = vmatprep.subr.bf16.mxu1 %v1699_v22  ;;  %v1704_v25 = vld [vmem:[#allocation2 + $0x60] ss:$8 sps:$4 sm:$0xff]   ;;  %v1705_v26 = vld [vmem:[#allocation2 + $0x54] ss:$8 sps:$4 sm:$0xff]   ;;  %v1707_v27 = vld [vmem:[#allocation2 + $0x50] ss:$8 sps:$4 sm:$0xff]  }
  0x20   : > { %v185_v2 = vld [vmem:[%s1855_s25] sm:$0xff]  ;;  %v186_v3 = vld [vmem:[%s1855_s25 + $0x8] sm:$0xff]  ;;  %v187_v4 = vld [vmem:[%s1855_s25 + $0x10] sm:$0xff]  ;;  %725 = vmatpush1.bf16.msra.mxu1 %v1701_v23  ;;  %vm1066_vm3 = vcmask 1043459   ;;  %vm1068_vm4 = vcmask 1044484   ;;  %vm1070_vm5 = vcmask 1045509  }
  0x21   : > { %301 = vperm.xlu1 %1675, %v185_v2   ;;  %206 = vperm.xlu0 %1674, %v185_v2   ;;  %v188_v5 = vld [vmem:[%s1855_s25 + $0x18] sm:$0xff]  ;;  %v189_v9 = vld [vmem:[%s1855_s25 + $0x20] sm:$0xff]  ;;  %v190_v11 = vld [vmem:[%s1855_s25 + $0x28] sm:$0xff]  ;;  %vm1072_vm6 = vcmask 1046534   ;;  %vm1074_vm7 = vcmask 1047559   ;;  %vm1795_vm8 = vmmov 0  }
  0x22   : > { %1596 = vmatpush3.bf16.msra.mxu0 %v1696_v7  ;;  %v191_v12 = vld [vmem:[%s1855_s25 + $0x30] sm:$0xff]  ;;  %v192_v14 = vld [vmem:[%s1855_s25 + $0x38] sm:$0xff]  ;;  %v194_v15 = vld [vmem:[%s1855_s25 + $0x48] sm:$0xff]  ;;  %726 = vmatprep.subr.bf16.mxu1 %v1702_v24  ;;  %s1483_s15 = sshll.u32 %s2095_s13, 3 }
  0x23   : > { %1597 = vmatprep.subr.bf16.mxu0 %v1697_v8  ;;  %v195_v13 = vld [vmem:[%s1855_s25 + $0x50] sm:$0xff]  ;;  %v193_v16 = vld [vmem:[%s1855_s25 + $0x40] sm:$0xff]  ;;  %v198_v17 = vld [vmem:[%s1855_s25 + $0x68] sm:$0xff]  ;;  %s183_s20 = scalar_lea.vmem %s2092_s3, %s1483_s15 }
  0x24   : > { %v199_v18 = vld [vmem:[%s1855_s25 + $0x70] sm:$0xff]  ;;  %v196_v19 = vld [vmem:[%s1855_s25 + $0x58] sm:$0xff]  ;;  %v197_v20 = vld [vmem:[%s1855_s25 + $0x60] sm:$0xff]  ;;  %727 = vmatpush1.bf16.msra.mxu1 %v1704_v25 }
  0x25   : > { %305 = vperm.xlu1 %1675, %v186_v3   ;;  %1677 = vset.pattern.permute.xlu0 %v1792_v0  ;;  %v200_v21 = vld [vmem:[%s1855_s25 + $0x78] sm:$0xff]  ;;  %v1708_v28 = vld [vmem:[#allocation2 + $0x44] ss:$8 sps:$4 sm:$0xff]   ;;  %v1710_v29 = vld [vmem:[#allocation2 + $0x40] ss:$8 sps:$4 sm:$0xff]  }
  0x26   : > { %309 = vperm.xlu0 %1677, %v187_v4   ;;  %1598 = vmatpush3.bf16.msra.mxu0 %v1697_v8  ;;  %v1711_v30 = vld [vmem:[#allocation2 + $0x34] ss:$8 sps:$4 sm:$0xff]   ;;  %v1713_v31 = vld [vmem:[#allocation2 + $0x30] ss:$8 sps:$4 sm:$0xff]   ;;  %v1895_v34 = vld [vmem:[%s2090_s1 + $0x1] ss:$0 sm:$0xff] }
  0x27   : > { %1599 = vmatprep.subr.bf16.mxu0 %v1698_v10  ;;  %728 = vmatprep.subr.bf16.mxu1 %v1705_v26  ;;  %v1900_v35 = vld [vmem:[%s2090_s1] ss:$0 sm:$0xff]  ;;  %v1907_v43 = vld [vmem:[%s2090_s1 + $0x2] ss:$0 sm:$0xff] }
  0x28   : > { %729 = vmatpush1.bf16.msra.mxu1 %v1707_v27 }
  0x29   : > { %1676 = vset.pattern.permute.xlu1 %v1793_v1  ;;  %730 = vmatprep.subr.bf16.mxu1 %v1708_v28 }
  0x2a   : > { %221 = vperm.xlu1 %1676, %v188_v5   ;;  %1678 = vset.pattern.permute.xlu0 %v1793_v1 }
  0x2b   : > { %211 = vperm.xlu0 %1678, %v186_v3   ;;  %1600 = vmatpush3.bf16.msra.mxu0 %v1698_v10 }
  0x2c   : > { %731 = vmatpush1.bf16.msra.mxu1 %v1710_v29 }
  0x2d   : > { %732 = vmatprep.subr.bf16.mxu1 %v1711_v30 }
  0x2e   : > { %1679 = vset.pattern.permute.xlu1 %v1792_v0 }
  0x2f   : > { %313 = vperm.xlu1 %1679, %v188_v5   ;;  %216 = vperm.xlu0 %1678, %v187_v4  }
  0x30   : > { %733 = vmatpush1.bf16.msra.mxu1 %v1713_v31 }
  0x33   : > { %1680 = vset.pattern.permute.xlu1 %v1793_v1  ;;  %231 = vperm.xlu0 %1678, %v190_v11  }
  0x34   : > { %226 = vperm.xlu1 %1680, %v189_v9  }
  0x37   : > { %236 = vperm.xlu0 %1678, %v191_v12  }
  0x38   : > { %1681 = vset.pattern.permute.xlu1 %v1792_v0 }
  0x39   : > { %317 = vperm.xlu1 %1681, %v189_v9  }
  0x3b   : > { %1683 = vset.pattern.permute.xlu0 %v1792_v0 }
  0x3c   : > { %325 = vperm.xlu0 %1683, %v191_v12  }
  0x3d   : > { %321 = vperm.xlu1 %1681, %v190_v11  }
  0x40   : > { %341 = vperm.xlu0 %1683, %v195_v13  }
  0x41   : > { %1682 = vset.pattern.permute.xlu1 %v1793_v1 }
  0x42   : > { %241 = vperm.xlu1 %1682, %v192_v14  }
  0x44   : > { %1688 = vset.pattern.permute.xlu0 %v1793_v1 }
  0x45   : > { %251 = vperm.xlu0 %1688, %v194_v15  }
  0x46   : > { %1684 = vset.pattern.permute.xlu1 %v1792_v0 }
  0x47   : > { %329 = vperm.xlu1 %1684, %v192_v14  }
  0x49   : > { %256 = vperm.xlu0 %1688, %v195_v13  }
  0x4b   : > { %1685 = vset.pattern.permute.xlu1 %v1793_v1 }
  0x4c   : > { %246 = vperm.xlu1 %1685, %v193_v16  }
  0x4d   : > { %271 = vperm.xlu0 %1688, %v198_v17  }
  0x50   : > { %1686 = vset.pattern.permute.xlu1 %v1792_v0 }
  0x51   : > { %333 = vperm.xlu1 %1686, %v193_v16   ;;  %276 = vperm.xlu0 %1688, %v199_v18  }
  0x55   : > { %337 = vperm.xlu1 %1686, %v194_v15   ;;  %1693 = vset.pattern.permute.xlu0 %v1792_v0 }
  0x56   : > { %357 = vperm.xlu0 %1693, %v199_v18  }
  0x59   : > { %1687 = vset.pattern.permute.xlu1 %v1793_v1 }
  0x5a   : > { %261 = vperm.xlu1 %1687, %v196_v19  }
  0x5e   : > { %1689 = vset.pattern.permute.xlu1 %v1792_v0 }
  0x5f   : > { %345 = vperm.xlu1 %1689, %v196_v19  }
  0x63   : > { %1690 = vset.pattern.permute.xlu1 %v1793_v1 }
  0x64   : > { %266 = vperm.xlu1 %1690, %v197_v20  }
  0x68   : > { %1691 = vset.pattern.permute.xlu1 %v1792_v0 }
  0x69   : > { %349 = vperm.xlu1 %1691, %v197_v20  }
  0x6d   : > { %353 = vperm.xlu1 %1691, %v198_v17  }
  0x71   : > { %1692 = vset.pattern.permute.xlu1 %v1793_v1 }
  0x72   : > { %281 = vperm.xlu1 %1692, %v200_v21  }
  0x76   : > { %1694 = vset.pattern.permute.xlu1 %v1792_v0 }
  0x77   : > { %361 = vperm.xlu1 %1694, %v200_v21  }
  0x9c   : > { %v302_v32 = vpop.permute.xlu1 %301  ;;  %v207_v33 = vpop.permute.xlu0 %206 }
  0x9d   : > { %v364_v37 = vmul.f32 %v302_v32, %v1895_v34  ;;  %v284_v38 = vmul.f32 %v207_v33, %v1900_v35 }
  0x9f   : > { %v380_v40 = vadd.f32 %v364_v37, %v284_v38 }
  0xa0   : > { %v306_v36 = vpop.permute.xlu1 %305 }
  0xa1   : > { %v310_v39 = vpop.permute.xlu0 %309  ;;  %v365_v44 = vmul.f32 %v306_v36, %v1895_v34  ;;  %v396_v48 = vadd.f32 %v380_v40, %v1907_v43 }
  0xa2   : > { %v366_v46 = vmul.f32 %v310_v39, %v1895_v34 }
  0xa3   : > { %v412_v57 = vmax.f32 %v396_v48, 0.0 }
  0xa5   : > { %v222_v41 = vpop.permute.xlu1 %221 }
  0xa6   : > { %v212_v42 = vpop.permute.xlu0 %211  ;;  %v287_v51 = vmul.f32 %v222_v41, %v1900_v35 }
  0xa7   : > { %v285_v45 = vmul.f32 %v212_v42, %v1900_v35 }
  0xa9   : > { %v381_v47 = vadd.f32 %v365_v44, %v285_v45 }
  0xaa   : > { %v314_v49 = vpop.permute.xlu1 %313  ;;  %v217_v50 = vpop.permute.xlu0 %216 }
  0xab   : > { %v367_v52 = vmul.f32 %v314_v49, %v1895_v34  ;;  %v286_v53 = vmul.f32 %v217_v50, %v1900_v35  ;;  %v397_v54 = vadd.f32 %v381_v47, %v1907_v43 }
  0xad   : > { %v383_v55 = vadd.f32 %v367_v52, %v287_v51  ;;  %v382_v56 = vadd.f32 %v366_v46, %v286_v53  ;;  %v413_v58 = vmax.f32 %v397_v54, 0.0 }
  0xae   : > { %v232_v59 = vpop.permute.xlu0 %231 }
  0xaf   : > { %v399_v60 = vadd.f32 %v383_v55, %v1907_v43  ;;  %v398_v61 = vadd.f32 %v382_v56, %v1907_v43  ;;  %v227_v62 = vpop.permute.xlu1 %226  ;;  %v428_v63 = vpack.c.bf16 %v413_v58, %v412_v57  ;;  %v289_v9 = vmul.f32 %v232_v59, %v1900_v35 }
  0xb0   : > { %v288_v6 = vmul.f32 %v227_v62, %v1900_v35 }
  0xb1   : > { %v415_v0 = vmax.f32 %v399_v60, 0.0  ;;  %v414_v2 = vmax.f32 %v398_v61, 0.0  ;;  %1601 = vmatprep.mubr.msk.bf16.mxu0 %vm469_vm0, %v428_v63 }
  0xb2   : > { %v237_v5 = vpop.permute.xlu0 %236 }
  0xb3   : > { %v429_v3 = vpack.c.bf16 %v415_v0, %v414_v2  ;;  %v290_v16 = vmul.f32 %v237_v5, %v1900_v35 }
  0xb4   : > { %v318_v4 = vpop.permute.xlu1 %317 }
  0xb5   : > { %v368_v7 = vmul.f32 %v318_v4, %v1895_v34  ;;  %1602 = vmatmul.mubr.msk.bf16.vlgmr.msra.gmra.mxu0 %vm469_vm0, %v429_v3 }
  0xb7   : > { %v384_v8 = vadd.f32 %v368_v7, %v288_v6  ;;  %v326_v12 = vpop.permute.xlu0 %325 }
  0xb8   : > { %v322_v10 = vpop.permute.xlu1 %321  ;;  %v370_v18 = vmul.f32 %v326_v12, %v1895_v34 }
  0xb9   : > { %v369_v11 = vmul.f32 %v322_v10, %v1895_v34  ;;  %v400_v13 = vadd.f32 %v384_v8, %v1907_v43 }
  0xba   : > { %v386_v22 = vadd.f32 %v370_v18, %v290_v16 }
  0xbb   : > { %v385_v14 = vadd.f32 %v369_v11, %v289_v9  ;;  %v416_v19 = vmax.f32 %v400_v13, 0.0  ;;  %v342_v28 = vpop.permute.xlu0 %341 }
  0xbc   : > { %v402_v26 = vadd.f32 %v386_v22, %v1907_v43  ;;  %v374_v48 = vmul.f32 %v342_v28, %v1895_v34 }
  0xbd   : > { %v401_v15 = vadd.f32 %v385_v14, %v1907_v43  ;;  %v242_v17 = vpop.permute.xlu1 %241 }
  0xbe   : > { %v291_v24 = vmul.f32 %v242_v17, %v1900_v35  ;;  %v418_v31 = vmax.f32 %v402_v26, 0.0  ;;  %v1714_v26 = vld [vmem:[#allocation2 + $0x24] ss:$8 sps:$4 sm:$0xff]  }
  0xbf   : > { %v417_v20 = vmax.f32 %v401_v15, 0.0  ;;  %734 = vmatprep.subr.bf16.mxu1 %v1714_v26 }
  0xc0   : > { %v252_v37 = vpop.permute.xlu0 %251 }
  0xc1   : > { %v430_v21 = vpack.c.bf16 %v417_v20, %v416_v19  ;;  %v293_v41 = vmul.f32 %v252_v37, %v1900_v35 }
  0xc2   : > { %v330_v23 = vpop.permute.xlu1 %329 }
  0xc3   : > { %v371_v25 = vmul.f32 %v330_v23, %v1895_v34  ;;  %1605 = vmatprep.mubr.msk.bf16.mxu0 %vm469_vm0, %v430_v21 }
  0xc4   : > { %v257_v45 = vpop.permute.xlu0 %256 }
  0xc5   : > { %v387_v27 = vadd.f32 %v371_v25, %v291_v24  ;;  %v294_v50 = vmul.f32 %v257_v45, %v1900_v35 }
  0xc7   : > { %v403_v29 = vadd.f32 %v387_v27, %v1907_v43  ;;  %v247_v30 = vpop.permute.xlu1 %246  ;;  %v390_v55 = vadd.f32 %v374_v48, %v294_v50 }
  0xc8   : > { %v292_v38 = vmul.f32 %v247_v30, %v1900_v35  ;;  %v272_v61 = vpop.permute.xlu0 %271 }
  0xc9   : > { %v419_v32 = vmax.f32 %v403_v29, 0.0  ;;  %v406_v59 = vadd.f32 %v390_v55, %v1907_v43  ;;  %v297_v10 = vmul.f32 %v272_v61, %v1900_v35  ;;  %v1716_v29 = vld [vmem:[#allocation2 + $0x20] ss:$8 sps:$4 sm:$0xff]  }
  0xca   : > { %735 = vmatpush1.bf16.msra.mxu1 %v1716_v29 }
  0xcb   : > { %v431_v33 = vpack.c.bf16 %v419_v32, %v418_v31  ;;  %v422_v0 = vmax.f32 %v406_v59, 0.0  ;;  %v1717_v31 = vld [vmem:[#allocation2 + $0x14] ss:$8 sps:$4 sm:$0xff]  }
  0xcc   : > { %v334_v36 = vpop.permute.xlu1 %333  ;;  %v277_v4 = vpop.permute.xlu0 %276  ;;  %736 = vmatprep.subr.bf16.mxu1 %v1717_v31 }
  0xcd   : > { %v372_v39 = vmul.f32 %v334_v36, %v1895_v34  ;;  %1606 = vmatmul.mubr.msk.bf16.gmra.mxu0 %vm469_vm0, %v431_v33  ;;  %v298_v15 = vmul.f32 %v277_v4, %v1900_v35  ;;  %v1719_v36 = vld [vmem:[#allocation2 + $0x10] ss:$8 sps:$4 sm:$0xff]  }
  0xce   : > { %737 = vmatpush1.bf16.msra.mxu1 %v1719_v36  ;;  %v1725_v36 = vld [vmem:[#allocation2 + $0x160] ss:$8 sps:$4 sm:$0xff]  }
  0xcf   : > { %v388_v40 = vadd.f32 %v372_v39, %v292_v38 }
  0xd0   : > { %v338_v42 = vpop.permute.xlu1 %337 }
  0xd1   : > { %v373_v44 = vmul.f32 %v338_v42, %v1895_v34  ;;  %v404_v46 = vadd.f32 %v388_v40, %v1907_v43  ;;  %v358_v12 = vpop.permute.xlu0 %357 }
  0xd2   : > { %v378_v16 = vmul.f32 %v358_v12, %v1895_v34 }
  0xd3   : > { %v389_v47 = vadd.f32 %v373_v44, %v293_v41  ;;  %v420_v52 = vmax.f32 %v404_v46, 0.0 }
  0xd4   : > { %v394_v21 = vadd.f32 %v378_v16, %v298_v15 }
  0xd5   : > { %v405_v49 = vadd.f32 %v389_v47, %v1907_v43  ;;  %v262_v51 = vpop.permute.xlu1 %261 }
  0xd6   : > { %v295_v57 = vmul.f32 %v262_v51, %v1900_v35  ;;  %v410_v27 = vadd.f32 %v394_v21, %v1907_v43 }
  0xd7   : > { %v421_v53 = vmax.f32 %v405_v49, 0.0 }
  0xd8   : > { %v426_v32 = vmax.f32 %v410_v27, 0.0 }
  0xd9   : > { %v432_v54 = vpack.c.bf16 %v421_v53, %v420_v52 }
  0xda   : > { %v346_v56 = vpop.permute.xlu1 %345 }
  0xdb   : > { %v375_v58 = vmul.f32 %v346_v56, %v1895_v34  ;;  %1609 = vmatprep.mubr.msk.bf16.mxu0 %vm469_vm0, %v432_v54 }
  0xdd   : > { %v391_v60 = vadd.f32 %v375_v58, %v295_v57 }
  0xdf   : > { %v407_v62 = vadd.f32 %v391_v60, %v1907_v43  ;;  %v267_v63 = vpop.permute.xlu1 %266 }
  0xe0   : > { %v296_v6 = vmul.f32 %v267_v63, %v1900_v35 }
  0xe1   : > { %v423_v2 = vmax.f32 %v407_v62, 0.0 }
  0xe3   : > { %v433_v3 = vpack.c.bf16 %v423_v2, %v422_v0 }
  0xe4   : > { %v350_v5 = vpop.permute.xlu1 %349 }
  0xe5   : > { %v376_v7 = vmul.f32 %v350_v5, %v1895_v34  ;;  %1610 = vmatmul.mubr.msk.bf16.gmra.mxu0 %vm469_vm0, %v433_v3 }
  0xe7   : > { %v392_v8 = vadd.f32 %v376_v7, %v296_v6 }
  0xe8   : > { %v354_v9 = vpop.permute.xlu1 %353 }
  0xe9   : > { %v377_v11 = vmul.f32 %v354_v9, %v1895_v34  ;;  %v408_v13 = vadd.f32 %v392_v8, %v1907_v43 }
  0xeb   : > { %v393_v14 = vadd.f32 %v377_v11, %v297_v10  ;;  %v424_v19 = vmax.f32 %v408_v13, 0.0 }
  0xed   : > { %v409_v17 = vadd.f32 %v393_v14, %v1907_v43  ;;  %v282_v18 = vpop.permute.xlu1 %281 }
  0xee   : > { %v299_v24 = vmul.f32 %v282_v18, %v1900_v35  ;;  %v1720_v35 = vld [vmem:[#allocation2 + $0x4] ss:$8 sps:$4 sm:$0xff]  }
  0xef   : > { %v425_v20 = vmax.f32 %v409_v17, 0.0  ;;  %738 = vmatprep.subr.bf16.mxu1 %v1720_v35  ;;  %v1727_v35 = vld [vmem:[#allocation2 + $0x150] ss:$8 sps:$4 sm:$0xff]  }
  0xf1   : > { %v434_v22 = vpack.c.bf16 %v425_v20, %v424_v19 }
  0xf2   : > { %v362_v23 = vpop.permute.xlu1 %361 }
  0xf3   : > { %v379_v25 = vmul.f32 %v362_v23, %v1895_v34  ;;  %1613 = vmatprep.mubr.msk.bf16.mxu0 %vm469_vm0, %v434_v22  ;;  %v1722_v34 = vld [vmem:[#allocation2] ss:$8 sps:$4 sm:$0xff]  }
  0xf4   : > { %739 = vmatpush1.bf16.msra.mxu1 %v1722_v34  ;;  %v1728_v34 = vld [vmem:[#allocation2 + $0xd0] ss:$8 sps:$4 sm:$0xff]  }
  0xf5   : > { %v395_v28 = vadd.f32 %v379_v25, %v299_v24 }
  0xf7   : > { %v411_v30 = vadd.f32 %v395_v28, %v1907_v43  ;;  %v1966_v43 = vld [vmem:[%s2090_s1 + $0x3] ss:$0 sm:$0xff] }
  0xf9   : > { %v427_v33 = vmax.f32 %v411_v30, 0.0 }
  0xfb   : > { %v435_v37 = vpack.c.bf16 %v427_v33, %v426_v32  ;;  %v1723_v32 = vld [vmem:[#allocation2 + $0x170] ss:$8 sps:$4 sm:$0xff]  }
  0xfc   : > { %v1724_v33 = vld [vmem:[#allocation2 + $0xf0] ss:$8 sps:$4 sm:$0xff]   ;;  %1557 = vmatprep.subr.bf16.mxu0 %v1723_v32 }
  0xfd   : > { %1614 = vmatmul.mubr.msk.bf16.gmra.mxu0 %vm469_vm0, %v435_v37  ;;  %v1726_v37 = vld [vmem:[#allocation2 + $0xe0] ss:$8 sps:$4 sm:$0xff]  }
  0xfe   : > { %1558 = vmatpush3.bf16.msra.mxu0 %v1724_v33 }
  0xff   : > { %1559 = vmatprep.subr.bf16.mxu0 %v1725_v36 }
 0x102   : > { %1560 = vmatpush3.bf16.msra.mxu0 %v1726_v37 }
 0x103   : > { %1561 = vmatprep.subr.bf16.mxu0 %v1727_v35 }
 0x106   : > { %1562 = vmatpush3.bf16.msra.mxu0 %v1728_v34 }
 0x175   : > { %v1603_v38 = vpop.f32.mrf.mxu0 }
 0x176   : > { %v537_v49 = vadd.f32 %v1603_v38, %v1966_v43  ;;  %v1729_v38 = vld [vmem:[#allocation2 + $0x140] ss:$8 sps:$4 sm:$0xff]  }
 0x177   : > { %v528_v39 = vpop.f32.mrf.mxu0  ;;  %1563 = vmatprep.subr.bf16.mxu0 %v1729_v38 }
 0x178   : > { %v529_v41 = vadd.f32 %v528_v39, %v1966_v43  ;;  %v593_v51 = vmax.f32 %v537_v49, 0.0  ;;  %v1730_v39 = vld [vmem:[#allocation2 + $0xc0] ss:$8 sps:$4 sm:$0xff]  }
 0x179   : > { %v1604_v40 = vpop.f32.mrf.mxu0  ;;  %1564 = vmatpush3.bf16.msra.mxu0 %v1730_v39 }
 0x17a   : > { %v591_v45 = vmax.f32 %v529_v41, 0.0  ;;  %v540_v47 = vadd.f32 %v1604_v40, %v1966_v43  ;;  %v1733_v40 = vld [vmem:[#allocation2 + $0x120] ss:$8 sps:$4 sm:$0xff]  }
 0x17b   : > { %v531_v42 = vpop.f32.mrf.mxu0  ;;  %v1734_v41 = vld [vmem:[#allocation2 + $0xa0] ss:$8 sps:$4 sm:$0xff]  }
 0x17c   : > { %v532_v44 = vadd.f32 %v531_v42, %v1966_v43  ;;  %v594_v50 = vmax.f32 %v540_v47, 0.0  ;;  %v1735_v42 = vld [vmem:[#allocation2 + $0x110] ss:$8 sps:$4 sm:$0xff]   ;;  %v1794_v47 = vmov 0.0  }
 0x17e   : > { %v592_v46 = vmax.f32 %v532_v44, 0.0  ;;  %v608_v52 = vpack.c.bf16 %v594_v50, %v593_v51  ;;  %v1736_v44 = vld [vmem:[#allocation2 + $0x90] ss:$8 sps:$4 sm:$0xff]  }
 0x180   : > { %v607_v48 = vpack.c.bf16 %v592_v46, %v591_v45  ;;  %v1737_v45 = vld [vmem:[#allocation2 + $0x100] ss:$8 sps:$4 sm:$0xff]  }
 0x181   : > { %v1738_v46 = vld [vmem:[#allocation2 + $0x80] ss:$8 sps:$4 sm:$0xff]  }
 0x182   : > { %757 = vmatmul.mubr.bf16.vlgmr.msra.gmra.mxu1 %v607_v48 }
 0x183   : > { %766 = vmatprep.mubr.bf16.mxu1 %v1793_v1 }
 0x18a   : > { %767 = vmatmul.mubr.bf16.gmra.mxu1 %v608_v52 }
 0x18b   : > { %776 = vmatprep.mubr.bf16.mxu1 %v1793_v1 }
 0x18d   : > { %v1607_v53 = vpop.f32.mrf.mxu0 }
 0x18e   : > { %v553_v63 = vadd.f32 %v1607_v53, %v1966_v43  ;;  %v634_v53 = vlaneseq }
 0x18f   : > { %v544_v54 = vpop.f32.mrf.mxu0 }
 0x190   : > { %v545_v56 = vadd.f32 %v544_v54, %v1966_v43  ;;  %v597_v2 = vmax.f32 %v553_v63, 0.0 }
 0x191   : > { %v1608_v55 = vpop.f32.mrf.mxu0 }
 0x192   : > { %v595_v59 = vmax.f32 %v545_v56, 0.0  ;;  %v556_v61 = vadd.f32 %v1608_v55, %v1966_v43  ;;  %v635_v55 = vshrl.u32 %v634_v53, 7 }
 0x193   : > { %v547_v57 = vpop.f32.mrf.mxu0 }
 0x194   : > { %v548_v58 = vadd.f32 %v547_v57, %v1966_v43  ;;  %v598_v0 = vmax.f32 %v556_v61, 0.0  ;;  %v636_v57 = vsub.s32 0, %v635_v55 }
 0x196   : > { %v596_v60 = vmax.f32 %v548_v58, 0.0  ;;  %v610_v3 = vpack.c.bf16 %v598_v0, %v597_v2  ;;  %v1496_v58 = vld [vmem:[%s2090_s1 + $0x4] ss:$8 sm:$0x3] }
 0x197   : > { %v1995_v61 = vrot.slane %v1496_v58, %v636_v57 }
 0x198   : > { %v609_v62 = vpack.c.bf16 %v596_v60, %v595_v59 }
 0x19a   : > { %777 = vmatmul.mubr.bf16.gmra.mxu1 %v609_v62  ;;  %v640_v62 = vsub.s32 1, %v635_v55 }
 0x19b   : > { %786 = vmatprep.mubr.bf16.mxu1 %v1793_v1 }
 0x1a2   : > { %787 = vmatmul.mubr.bf16.gmra.mxu1 %v610_v3 }
 0x1a3   : > { %796 = vmatprep.mubr.bf16.mxu1 %v1793_v1 }
 0x1a5   : > { %v1611_v4 = vpop.f32.mrf.mxu0 }
 0x1a6   : > { %v569_v14 = vadd.f32 %v1611_v4, %v1966_v43  ;;  %v1999_v4 = vrot.slane %v1496_v58, %v640_v62 }
 0x1a7   : > { %v560_v5 = vpop.f32.mrf.mxu0 }
 0x1a8   : > { %v561_v7 = vadd.f32 %v560_v5, %v1966_v43  ;;  %v601_v16 = vmax.f32 %v569_v14, 0.0 }
 0x1a9   : > { %v1612_v6 = vpop.f32.mrf.mxu0 }
 0x1aa   : > { %v599_v10 = vmax.f32 %v561_v7, 0.0  ;;  %v572_v12 = vadd.f32 %v1612_v6, %v1966_v43 }
 0x1ab   : > { %v563_v8 = vpop.f32.mrf.mxu0 }
 0x1ac   : > { %v564_v9 = vadd.f32 %v563_v8, %v1966_v43  ;;  %v602_v15 = vmax.f32 %v572_v12, 0.0 }
 0x1ae   : > { %v600_v11 = vmax.f32 %v564_v9, 0.0  ;;  %v612_v17 = vpack.c.bf16 %v602_v15, %v601_v16 }
 0x1b0   : > { %v611_v13 = vpack.c.bf16 %v600_v11, %v599_v10 }
 0x1b2   : > { %797 = vmatmul.mubr.bf16.gmra.mxu1 %v611_v13 }
 0x1b3   : > { %806 = vmatprep.mubr.bf16.mxu1 %v1793_v1 }
 0x1ba   : > { %807 = vmatmul.mubr.bf16.gmra.mxu1 %v612_v17 }
 0x1bb   : > { %816 = vmatprep.mubr.bf16.mxu1 %v1793_v1 }
 0x1bd   : > { %v1615_v18 = vpop.f32.mrf.mxu0 }
 0x1be   : > { %v585_v28 = vadd.f32 %v1615_v18, %v1966_v43 }
 0x1bf   : > { %v576_v19 = vpop.f32.mrf.mxu0 }
 0x1c0   : > { %v577_v21 = vadd.f32 %v576_v19, %v1966_v43  ;;  %v605_v30 = vmax.f32 %v585_v28, 0.0 }
 0x1c1   : > { %v1616_v20 = vpop.f32.mrf.mxu0 }
 0x1c2   : > { %v603_v24 = vmax.f32 %v577_v21, 0.0  ;;  %v588_v26 = vadd.f32 %v1616_v20, %v1966_v43 }
 0x1c3   : > { %v579_v22 = vpop.f32.mrf.mxu0 }
 0x1c4   : > { %v580_v23 = vadd.f32 %v579_v22, %v1966_v43  ;;  %v606_v29 = vmax.f32 %v588_v26, 0.0  ;;  %v1732_v43 = vld [vmem:[#allocation2 + $0xb0] ss:$8 sps:$4 sm:$0xff]  }
 0x1c6   : > { %v604_v25 = vmax.f32 %v580_v23, 0.0  ;;  %v614_v31 = vpack.c.bf16 %v606_v29, %v605_v30 }
 0x1c8   : > { %v613_v27 = vpack.c.bf16 %v604_v25, %v603_v24 }
 0x1ca   : > { %817 = vmatmul.mubr.bf16.gmra.mxu1 %v613_v27 }
 0x1cb   : > { %826 = vmatprep.mubr.bf16.mxu1 %v1793_v1  ;;  %v1731_v1 = vld [vmem:[#allocation2 + $0x130] ss:$8 sps:$4 sm:$0xff]  }
 0x1cc   : > { %1565 = vmatprep.subr.bf16.mxu0 %v1731_v1 }
 0x1cd   : > { %1566 = vmatpush3.bf16.msra.mxu0 %v1732_v43 }
 0x1ce   : > { %1567 = vmatprep.subr.bf16.mxu0 %v1733_v40 }
 0x1d1   : > { %1568 = vmatpush3.bf16.msra.mxu0 %v1734_v41 }
 0x1d2   : > { %827 = vmatmul.mubr.bf16.gmra.mxu1 %v614_v31  ;;  %1569 = vmatprep.subr.bf16.mxu0 %v1735_v42 }
 0x1d5   : > { %1570 = vmatpush3.bf16.msra.mxu0 %v1736_v44 }
 0x1d6   : > { %1571 = vmatprep.subr.bf16.mxu0 %v1737_v45 }
 0x1d9   : > { %1572 = vmatpush3.bf16.msra.mxu0 %v1738_v46 }
 0x1da   : > { %1617 = vmatprep.subr.bf16.mxu0 %v1794_v47 }
 0x242   : > { %v758_v48 = vpop.f32.mrf.mxu1 }
 0x243   : > { %v759_v3 = vadd.f32 %v758_v48, %v1995_v61 }
 0x244   : > { %v760_v49 = vpop.f32.mrf.mxu1 }
 0x245   : > { %v837_v8 = vmax.f32 %v759_v3, 0.0  ;;  %v761_v9 = vadd.f32 %v760_v49, %v1999_v4 }
 0x246   : > { %v762_v50 = vpop.f32.mrf.mxu1 }
 0x247   : > { %v763_v0 = vadd.f32 %v762_v50, %v1995_v61  ;;  %v838_v13 = vmax.f32 %v761_v9, 0.0 }
 0x248   : > { %v764_v51 = vpop.f32.mrf.mxu1 }
 0x249   : > { %v839_v6 = vmax.f32 %v763_v0, 0.0  ;;  %v765_v7 = vadd.f32 %v764_v51, %v1999_v4 }
 0x24a   : > { %v768_v52 = vpop.f32.mrf.mxu1 }
 0x24b   : > { %v869_v11 = vmax.f32 %v837_v8, %v839_v6  ;;  %v840_v12 = vmax.f32 %v765_v7, 0.0  ;;  %v769_v21 = vadd.f32 %v768_v52, %v1995_v61 }
 0x24c   : > { %v770_v54 = vpop.f32.mrf.mxu1 }
 0x24d   : > { %v885_v15 = vrot.slane %v869_v11, 4  ;;  %v870_v16 = vmax.f32 %v838_v13, %v840_v12  ;;  %v841_v28 = vmax.f32 %v769_v21, 0.0  ;;  %v771_v29 = vadd.f32 %v770_v54, %v1999_v4 }
 0x24e   : > { %v772_v56 = vpop.f32.mrf.mxu1 }
 0x24f   : > { %v886_v18 = vmax.f32 %v869_v11, %v885_v15  ;;  %v891_v19 = vrot.slane %v870_v16, 4  ;;  %v773_v20 = vadd.f32 %v772_v56, %v1995_v61  ;;  %v842_v35 = vmax.f32 %v771_v29, 0.0 }
 0x250   : > { %v774_v59 = vpop.f32.mrf.mxu1 }
 0x251   : > { %v887_v23 = vrot.slane %v886_v18, 2  ;;  %v892_v24 = vmax.f32 %v870_v16, %v891_v19  ;;  %v843_v25 = vmax.f32 %v773_v20, 0.0  ;;  %v775_v26 = vadd.f32 %v774_v59, %v1999_v4 }
 0x253   : > { %v888_v31 = vmax.f32 %v886_v18, %v887_v23  ;;  %v893_v32 = vrot.slane %v892_v24, 2  ;;  %v871_v33 = vmax.f32 %v841_v28, %v843_v25  ;;  %v844_v36 = vmax.f32 %v775_v26, 0.0 }
 0x255   : > { %v889_v38 = vrot.slane %v888_v31, 1  ;;  %v894_v1 = vmax.f32 %v892_v24, %v893_v32  ;;  %v897_v43 = vrot.slane %v871_v33, 4  ;;  %v872_v40 = vmax.f32 %v842_v35, %v844_v36 }
 0x257   : > { %v890_v48 = vmax.f32 %v888_v31, %v889_v38  ;;  %v895_v52 = vrot.slane %v894_v1, 1  ;;  %v898_v53 = vmax.f32 %v871_v33, %v897_v43  ;;  %v903_v54 = vrot.slane %v872_v40, 4 }
 0x259   : > { %v904_v13 = vmax.f32 %v872_v40, %v903_v54  ;;  %v899_v21 = vrot.slane %v898_v53, 2  ;;  %v896_v29 = vmax.f32 %v894_v1, %v895_v52 }
 0x25a   : > { %v778_v60 = vpop.f32.mrf.mxu1 }
 0x25b   : > { %v779_v42 = vadd.f32 %v778_v60, %v1995_v61  ;;  %v905_v31 = vrot.slane %v904_v13, 2 }
 0x25c   : > { %v780_v63 = vpop.f32.mrf.mxu1 }
 0x25d   : > { %v781_v45 = vadd.f32 %v780_v63, %v1999_v4  ;;  %v845_v57 = vmax.f32 %v779_v42, 0.0 }
 0x25e   : > { %v782_v2 = vpop.f32.mrf.mxu1 }
 0x25f   : > { %v783_v39 = vadd.f32 %v782_v2, %v1995_v61  ;;  %v846_v62 = vmax.f32 %v781_v45, 0.0 }
 0x260   : > { %v784_v5 = vpop.f32.mrf.mxu1 }
 0x261   : > { %v785_v44 = vadd.f32 %v784_v5, %v1999_v4  ;;  %v847_v49 = vmax.f32 %v783_v39, 0.0 }
 0x262   : > { %v788_v10 = vpop.f32.mrf.mxu1 }
 0x263   : > { %v848_v58 = vmax.f32 %v785_v44, 0.0  ;;  %v789_v59 = vadd.f32 %v788_v10, %v1995_v61  ;;  %v873_v5 = vmax.f32 %v845_v57, %v847_v49  ;;  %v906_v44 = vmax.f32 %v904_v13, %v905_v31 }
 0x264   : > { %v790_v14 = vpop.f32.mrf.mxu1 }
 0x265   : > { %v791_v60 = vadd.f32 %v790_v14, %v1999_v4  ;;  %v874_v14 = vmax.f32 %v846_v62, %v848_v58  ;;  %v849_v15 = vmax.f32 %v789_v59, 0.0  ;;  %v907_v62 = vrot.slane %v906_v44, 1 }
 0x266   : > { %v792_v17 = vpop.f32.mrf.mxu1 }
 0x267   : > { %v793_v50 = vadd.f32 %v792_v17, %v1995_v61  ;;  %v850_v16 = vmax.f32 %v791_v60, 0.0 }
 0x268   : > { %v794_v22 = vpop.f32.mrf.mxu1 }
 0x269   : > { %v795_v51 = vadd.f32 %v794_v22, %v1999_v4  ;;  %v851_v6 = vmax.f32 %v793_v50, 0.0  ;;  %v909_v22 = vrot.slane %v873_v5, 4 }
 0x26b   : > { %v852_v7 = vmax.f32 %v795_v51, 0.0  ;;  %v875_v23 = vmax.f32 %v849_v15, %v851_v6  ;;  %v910_v35 = vmax.f32 %v873_v5, %v909_v22 }
 0x26d   : > { %v876_v24 = vmax.f32 %v850_v16, %v852_v7  ;;  %v921_v38 = vrot.slane %v875_v23, 4  ;;  %v911_v51 = vrot.slane %v910_v35, 2 }
 0x26f   : > { %v927_v39 = vrot.slane %v876_v24, 4  ;;  %v912_v5 = vmax.f32 %v910_v35, %v911_v51 }
 0x272   : > { %v798_v27 = vpop.f32.mrf.mxu1 }
 0x273   : > { %v799_v63 = vadd.f32 %v798_v27, %v1995_v61 }
 0x274   : > { %v800_v30 = vpop.f32.mrf.mxu1 }
 0x275   : > { %v801_v9 = vadd.f32 %v800_v30, %v1999_v4  ;;  %v853_v17 = vmax.f32 %v799_v63, 0.0  ;;  %v915_v30 = vrot.slane %v874_v14, 4 }
 0x276   : > { %v802_v37 = vpop.f32.mrf.mxu1 }
 0x277   : > { %v803_v55 = vadd.f32 %v802_v37, %v1995_v61  ;;  %v854_v25 = vmax.f32 %v801_v9, 0.0  ;;  %v981_v37 = vpack.c.bf16 %v890_v48, %v890_v48  ;;  %v916_v42 = vmax.f32 %v874_v14, %v915_v30 }
 0x278   : > { %v804_v34 = vpop.f32.mrf.mxu1  ;;  %v922_v48 = vmax.f32 %v875_v23, %v921_v38  ;;  %v2034_v23 = vmax.f32 %v906_v44, %v907_v62 }
 0x279   : > { %v805_v0 = vadd.f32 %v804_v34, %v1999_v4  ;;  %v855_v11 = vmax.f32 %v803_v55, 0.0  ;;  %v900_v34 = vmax.f32 %v898_v53, %v899_v21  ;;  %v2023_v1 = vunpack.c.l.b16 %v981_v37 }
 0x27a   : > { %v808_v41 = vpop.f32.mrf.mxu1  ;;  %v928_v55 = vmax.f32 %v876_v24, %v927_v39  ;;  %v917_v58 = vrot.slane %v916_v42, 2  ;;  %v913_v24 = vrot.slane %v912_v5, 1 }
 0x27b   : > { %v809_v10 = vadd.f32 %v808_v41, %v1995_v61  ;;  %v856_v18 = vmax.f32 %v805_v0, 0.0  ;;  %v877_v26 = vmax.f32 %v853_v17, %v855_v11  ;;  %v982_v41 = vpack.c.bf16 %v896_v29, %v896_v29 }
 0x27c   : > { %v810_v46 = vpop.f32.mrf.mxu1  ;;  %v901_v54 = vrot.slane %v900_v34, 1  ;;  %v923_v11 = vrot.slane %v922_v48, 2  ;;  %v918_v14 = vmax.f32 %v916_v42, %v917_v58 }
 0x27d   : > { %v811_v12 = vadd.f32 %v810_v46, %v1999_v4  ;;  %v857_v27 = vmax.f32 %v809_v10, 0.0  ;;  %v878_v32 = vmax.f32 %v854_v25, %v856_v18  ;;  %v933_v43 = vrot.slane %v877_v26, 4 }
 0x27e   : > { %v812_v56 = vpop.f32.mrf.mxu1  ;;  %v2026_v57 = vunpack.c.l.b16 %v982_v41  ;;  %v2031_v9 = vmax.f32 %v900_v34, %v901_v54  ;;  %v929_v10 = vrot.slane %v928_v55, 2 }
 0x27f   : > { %v813_v2 = vadd.f32 %v812_v56, %v1995_v61  ;;  %v858_v28 = vmax.f32 %v811_v12, 0.0  ;;  %v939_v45 = vrot.slane %v878_v32, 4  ;;  %v934_v53 = vmax.f32 %v877_v26, %v933_v43 }
 0x280   : > { %v814_v3 = vpop.f32.mrf.mxu1 }
 0x281   : > { %v815_v8 = vadd.f32 %v814_v3, %v1999_v4  ;;  %v859_v19 = vmax.f32 %v813_v2, 0.0  ;;  %v940_v63 = vmax.f32 %v878_v32, %v939_v45  ;;  %v935_v12 = vrot.slane %v934_v53, 2 }
 0x282   : > { %v919_v32 = vrot.slane %v918_v14, 1 }
 0x283   : > { %v860_v20 = vmax.f32 %v815_v8, 0.0  ;;  %v879_v33 = vmax.f32 %v857_v27, %v859_v19  ;;  %v941_v18 = vrot.slane %v940_v63, 2  ;;  %v924_v27 = vmax.f32 %v922_v48, %v923_v11 }
 0x284   : > { %v936_v29 = vmax.f32 %v934_v53, %v935_v12 }
 0x285   : > { %v880_v36 = vmax.f32 %v858_v28, %v860_v20  ;;  %v945_v46 = vrot.slane %v879_v33, 4  ;;  %v930_v28 = vmax.f32 %v928_v55, %v929_v10  ;;  %v942_v35 = vmax.f32 %v940_v63, %v941_v18 }
 0x286   : > { %v925_v45 = vrot.slane %v924_v27, 1  ;;  %v920_v63 = vmax.f32 %v918_v14, %v919_v32 }
 0x287   : > { %v951_v49 = vrot.slane %v880_v36, 4  ;;  %v946_v0 = vmax.f32 %v879_v33, %v945_v46  ;;  %v931_v46 = vrot.slane %v930_v28, 1  ;;  %v943_v55 = vrot.slane %v942_v35, 1 }
 0x288   : > { %v986_v14 = vpack.c.bf16 %v920_v63, %v920_v63  ;;  %v1739_v63 = vld [vmem:[#allocation2 + $0x134] ss:$8 sps:$4 sm:$0xff]  }
 0x289   : > { %v952_v2 = vmax.f32 %v880_v36, %v951_v49  ;;  %v947_v19 = vrot.slane %v946_v0, 2  ;;  %v937_v49 = vrot.slane %v936_v29, 1  ;;  %v944_v10 = vmax.f32 %v942_v35, %v943_v55 }
 0x28a   : > { %v818_v40 = vpop.f32.mrf.mxu1 }
 0x28b   : > { %v819_v52 = vadd.f32 %v818_v40, %v1995_v61  ;;  %v953_v20 = vrot.slane %v952_v2, 2  ;;  %v948_v34 = vmax.f32 %v946_v0, %v947_v19  ;;  %v926_v0 = vmax.f32 %v924_v27, %v925_v45 }
 0x28c   : > { %v820_v50 = vpop.f32.mrf.mxu1 }
 0x28d   : > { %v821_v59 = vadd.f32 %v820_v50, %v1999_v4  ;;  %v861_v6 = vmax.f32 %v819_v52, 0.0  ;;  %v954_v38 = vmax.f32 %v952_v2, %v953_v20  ;;  %v949_v53 = vrot.slane %v948_v34, 1 }
 0x28e   : > { %v822_v56 = vpop.f32.mrf.mxu1  ;;  %v932_v2 = vmax.f32 %v930_v28, %v931_v46  ;;  %v987_v18 = vpack.c.bf16 %v926_v0, %v926_v0 }
 0x28f   : > { %v823_v60 = vadd.f32 %v822_v56, %v1995_v61  ;;  %v862_v15 = vmax.f32 %v821_v59, 0.0  ;;  %v955_v56 = vrot.slane %v954_v38, 1  ;;  %v950_v12 = vmax.f32 %v948_v34, %v949_v53 }
 0x290   : > { %v824_v3 = vpop.f32.mrf.mxu1  ;;  %v988_v20 = vpack.c.bf16 %v932_v2, %v932_v2  ;;  %v1740_v2 = vld [vmem:[#allocation2 + $0x124] ss:$8 sps:$4 sm:$0xff]  }
 0x291   : > { %v863_v7 = vmax.f32 %v823_v60, 0.0  ;;  %v825_v8 = vadd.f32 %v824_v3, %v1999_v4  ;;  %v938_v3 = vmax.f32 %v936_v29, %v937_v49  ;;  %v991_v27 = vpack.c.bf16 %v950_v12, %v950_v12  ;;  %v1029_v12 = vld [vmem:[%s2090_s1 + $0x5] ss:$0 sm:$0xff] }
 0x292   : > { %v828_v13 = vpop.f32.mrf.mxu1  ;;  %v1053_v35 = vunpack.c.l.b16 %v988_v20  ;;  %v1748_v20 = vld [vmem:[#allocation2 + $0x164] ss:$8 sps:$4 sm:$0xff]  }
 0x293   : > { %v881_v16 = vmax.f32 %v861_v6, %v863_v7  ;;  %v864_v17 = vmax.f32 %v825_v8, 0.0  ;;  %v829_v21 = vadd.f32 %v828_v13, %v1995_v61  ;;  %v956_v13 = vmax.f32 %v954_v38, %v955_v56 }
 0x294   : > { %v830_v22 = vpop.f32.mrf.mxu1 }
 0x295   : > { %v957_v25 = vrot.slane %v881_v16, 4  ;;  %v882_v26 = vmax.f32 %v862_v15, %v864_v17  ;;  %v831_v30 = vadd.f32 %v830_v22, %v1999_v4  ;;  %v865_v39 = vmax.f32 %v829_v21, 0.0 }
 0x296   : > { %v832_v31 = vpop.f32.mrf.mxu1  ;;  %v989_v21 = vpack.c.bf16 %v938_v3, %v938_v3  ;;  %v992_v28 = vpack.c.bf16 %v956_v13, %v956_v13  ;;  %v1741_v3 = vld [vmem:[#allocation2 + $0x114] ss:$8 sps:$4 sm:$0xff]  }
 0x297   : > { %v958_v33 = vmax.f32 %v881_v16, %v957_v25  ;;  %v963_v36 = vrot.slane %v882_v26, 4  ;;  %v833_v37 = vadd.f32 %v832_v31, %v1995_v61  ;;  %v866_v50 = vmax.f32 %v831_v30, 0.0 }
 0x298   : > { %v834_v43 = vpop.f32.mrf.mxu1  ;;  %v914_v61 = vmax.f32 %v912_v5, %v913_v24  ;;  %v984_v5 = vpack.c.bf16 %v2034_v23, %v2034_v23  ;;  %v1054_v34 = vunpack.c.l.b16 %v989_v21  ;;  %v1749_v21 = vld [vmem:[#allocation2 + $0x154] ss:$8 sps:$4 sm:$0xff]  }
 0x299   : > { %v959_v40 = vrot.slane %v958_v33, 2  ;;  %v964_v41 = vmax.f32 %v882_v26, %v963_v36  ;;  %v867_v42 = vmax.f32 %v833_v37, 0.0  ;;  %v835_v44 = vadd.f32 %v834_v43, %v1999_v4 }
 0x29a   : > { %v983_v4 = vpack.c.bf16 %v2031_v9, %v2031_v9  ;;  %v985_v11 = vpack.c.bf16 %v914_v61, %v914_v61  ;;  %v1049_v25 = vunpack.c.l.b16 %v984_v5  ;;  %v990_v26 = vpack.c.bf16 %v944_v10, %v944_v10  ;;  %v1745_v5 = vld [vmem:[#allocation2 + $0xd4] ss:$8 sps:$4 sm:$0xff]  }
 0x29b   : > { %v960_v51 = vmax.f32 %v958_v33, %v959_v40  ;;  %v965_v52 = vrot.slane %v964_v41, 2  ;;  %v883_v54 = vmax.f32 %v865_v39, %v867_v42  ;;  %v868_v48 = vmax.f32 %v835_v44, 0.0 }
 0x29c   : > { %v1048_v9 = vunpack.c.l.b16 %v983_v4  ;;  %v1050_v23 = vunpack.c.l.b16 %v985_v11  ;;  %v1051_v33 = vunpack.c.l.b16 %v986_v14  ;;  %v1052_v36 = vunpack.c.l.b16 %v987_v18  ;;  %v1746_v11 = vld [vmem:[#allocation2 + $0xc4] ss:$8 sps:$4 sm:$0xff]   ;;  %v1747_v18 = vld [vmem:[#allocation2 + $0x174] ss:$8 sps:$4 sm:$0xff]  }
 0x29d   : > { %v961_v58 = vrot.slane %v960_v51, 1  ;;  %v966_v59 = vmax.f32 %v964_v41, %v965_v52  ;;  %v969_v60 = vrot.slane %v883_v54, 4  ;;  %v884_v62 = vmax.f32 %v866_v50, %v868_v48 }
 0x29e   : > { %v1063_v32 = vsel %vm1062_vm1, %v1048_v9, %v2023_v1  ;;  %v1076_v43 = vsel %vm1062_vm1, %v1049_v25, %v2026_v57  ;;  %v1055_v41 = vunpack.c.l.b16 %v990_v26  ;;  %v1056_v42 = vunpack.c.l.b16 %v991_v27 }
 0x29f   : > { %v967_v6 = vrot.slane %v966_v59, 1  ;;  %v970_v7 = vmax.f32 %v883_v54, %v969_v60  ;;  %v975_v8 = vrot.slane %v884_v62, 4  ;;  %v962_v15 = vmax.f32 %v960_v51, %v961_v58 }
 0x2a0   : > { %v1065_v40 = vsel %vm1064_vm2, %v1050_v23, %v1063_v32  ;;  %v1057_v44 = vunpack.c.l.b16 %v992_v28  ;;  %v1077_v1 = vsel %vm1064_vm2, %v1051_v33, %v1076_v43 }
 0x2a1   : > { %v971_v16 = vrot.slane %v970_v7, 2  ;;  %v976_v17 = vmax.f32 %v884_v62, %v975_v8  ;;  %v968_v19 = vmax.f32 %v966_v59, %v967_v6  ;;  %v993_v29 = vpack.c.bf16 %v962_v15, %v962_v15  ;;  %v1742_v6 = vld [vmem:[#allocation2 + $0x104] ss:$8 sps:$4 sm:$0xff]  }
 0x2a2   : > { %v1067_v50 = vsel %vm1066_vm3, %v1052_v36, %v1065_v40  ;;  %v1078_v57 = vsel %vm1066_vm3, %v1053_v35, %v1077_v1  ;;  %v1744_v8 = vld [vmem:[#allocation2 + $0xe4] ss:$8 sps:$4 sm:$0xff]  }
 0x2a3   : > { %v972_v22 = vmax.f32 %v970_v7, %v971_v16  ;;  %v977_v24 = vrot.slane %v976_v17, 2  ;;  %v994_v37 = vpack.c.bf16 %v968_v19, %v968_v19  ;;  %v1058_v45 = vunpack.c.l.b16 %v993_v29  ;;  %v1743_v7 = vld [vmem:[#allocation2 + $0xf4] ss:$8 sps:$4 sm:$0xff]  }
 0x2a4   : > { %v1069_v48 = vsel %vm1068_vm4, %v1054_v34, %v1067_v50  ;;  %v1079_v55 = vsel %vm1068_vm4, %v1055_v41, %v1078_v57 }
 0x2a5   : > { %v973_v30 = vrot.slane %v972_v22, 1  ;;  %v978_v31 = vmax.f32 %v976_v17, %v977_v24  ;;  %v1059_v51 = vunpack.c.l.b16 %v994_v37  ;;  %v1071_v61 = vsel %vm1070_vm5, %v1056_v42, %v1069_v48  ;;  %v1241_v24 = vld [vmem:[%s2090_s1 + $0x6] ss:$0 sm:$0xff] }
 0x2a6   : > { %v1073_v56 = vsel %vm1072_vm6, %v1058_v45, %v1071_v61  ;;  %v1080_v58 = vsel %vm1070_vm5, %v1057_v44, %v1079_v55 }
 0x2a7   : > { %v974_v38 = vmax.f32 %v972_v22, %v973_v30  ;;  %v979_v39 = vrot.slane %v978_v31, 1  ;;  %v1081_v60 = vsel %vm1072_vm6, %v1059_v51, %v1080_v58  ;;  %v1750_v22 = vld [vmem:[#allocation2 + $0x144] ss:$8 sps:$4 sm:$0xff]  }
 0x2a9   : > { %v995_v46 = vpack.c.bf16 %v974_v38, %v974_v38  ;;  %v980_v49 = vmax.f32 %v978_v31, %v979_v39 }
 0x2ab   : > { %v1060_v52 = vunpack.c.l.b16 %v995_v46  ;;  %v996_v54 = vpack.c.bf16 %v980_v49, %v980_v49 }
 0x2ad   : > { %v1061_v53 = vunpack.c.l.b16 %v996_v54  ;;  %v1075_v59 = vsel %vm1074_vm7, %v1060_v52, %v1073_v56 }
 0x2ae   : > { %v1083_v0 = vpack.c.b16 %v1075_v59, %v1075_v59 }
 0x2af   : > { %v1082_v62 = vsel %vm1074_vm7, %v1061_v53, %v1081_v60 }
 0x2b0   : > { %v1084_v4 = vpack.c.b16 %v1082_v62, %v1082_v62 }
 0x2b2   : > { %1215 = vmatprep.mubr.bf16.mxu0 %v1084_v4 }
 0x2b3   : > { %1216 = vmatmul.mubr.bf16.vlgmr.msra.gmra.mxu0 %v1083_v0 }
 0x2b4   : > { %1618 = vmatpush3.bf16.msra.mxu0 %v1739_v63  ;;  %1633 = vmatprep.mubr.msk.bf16.mxu0 %vm1795_vm8, %v1794_v47 }
 0x2b5   : > { %1619 = vmatprep.subr.bf16.mxu0 %v1794_v47 }
 0x2b8   : > { %1620 = vmatpush3.bf16.msra.mxu0 %v1740_v2 }
 0x2b9   : > { %1621 = vmatprep.subr.bf16.mxu0 %v1794_v47 }
 0x2bc   : > { %1622 = vmatpush3.bf16.msra.mxu0 %v1741_v3 }
 0x2bd   : > { %1623 = vmatprep.subr.bf16.mxu0 %v1794_v47 }
 0x2c0   : > { %1624 = vmatpush3.bf16.msra.mxu0 %v1742_v6 }
 0x2c1   : > { %1625 = vmatprep.subr.bf16.mxu0 %v1794_v47 }
 0x2c4   : > { %1626 = vmatpush3.bf16.msra.mxu0 %v1743_v7 }
 0x2c5   : > { %1627 = vmatprep.subr.bf16.mxu0 %v1794_v47 }
 0x2c8   : > { %1628 = vmatpush3.bf16.msra.mxu0 %v1744_v8 }
 0x2c9   : > { %1629 = vmatprep.subr.bf16.mxu0 %v1794_v47 }
 0x2cc   : > { %1630 = vmatpush3.bf16.msra.mxu0 %v1745_v5 }
 0x2cd   : > { %1631 = vmatprep.subr.bf16.mxu0 %v1794_v47 }
 0x2d0   : > { %1632 = vmatpush3.bf16.msra.mxu0 %v1746_v11 }
 0x2d1   : > { %1637 = vmatprep.subr.bf16.mxu0 %v1794_v47 }
 0x373   : > { %v1573_v10 = vpop.f32.mrf.mxu0 }
 0x375   : > { %v1574_v13 = vpop.f32.mrf.mxu0 }
 0x376   : > { %v1575_v15 = vadd.f32 %v1574_v13, %v1573_v10 }
 0x377   : > { %v1576_v16 = vpop.f32.mrf.mxu0 }
 0x378   : > { %v1218_v17 = vadd.f32 %v1575_v15, %v1029_v12 }
 0x379   : > { %v1577_v9 = vpop.f32.mrf.mxu0 }
 0x37a   : > { %v1223_v14 = vmax.f32 %v1218_v17, 0.0 }
 0x37c   : > { %v1224_v19 = vpack.c.bf16 %v1223_v14, %v1223_v14 }
 0x37e   : > { %1634 = vmatmul.mubr.bf16.vlgmr.msra.gmra.mxu0 %v1224_v19 }
 0x37f   : > { %1638 = vmatpush3.bf16.msra.mxu0 %v1747_v18  ;;  %1645 = vmatprep.mubr.msk.bf16.mxu0 %vm1795_vm8, %v1794_v47 }
 0x380   : > { %1639 = vmatprep.subr.bf16.mxu0 %v1794_v47 }
 0x383   : > { %1640 = vmatpush3.bf16.msra.mxu0 %v1748_v20 }
 0x384   : > { %1641 = vmatprep.subr.bf16.mxu0 %v1794_v47 }
 0x387   : > { %1642 = vmatpush3.bf16.msra.mxu0 %v1749_v21 }
 0x388   : > { %1643 = vmatprep.subr.bf16.mxu0 %v1794_v47  ;;  %v1340_v47 = vld [vmem:[%s2090_s1 + $0x7] ss:$0 sm:$0xff] }
 0x38b   : > { %1644 = vmatpush3.bf16.msra.mxu0 %v1750_v22 }
 0x43e   : > { %v1324_v25 = vpop.f32.mrf.mxu0 }
 0x43f   : > { %v1325_v23 = vadd.f32 %v1324_v25, %v1241_v24 }
 0x440   : > { %v1635_v26 = vpop.f32.mrf.mxu0 }
 0x441   : > { %v1330_v27 = vmax.f32 %v1325_v23, 0.0 }
 0x442   : > { %v1327_v28 = vpop.f32.mrf.mxu0 }
 0x443   : > { %v1331_v29 = vpack.c.bf16 %v1330_v27, %v1330_v27 }
 0x444   : > { %v1636_v30 = vpop.f32.mrf.mxu0 }
 0x445   : > { %1646 = vmatmul.mubr.msk.bf16.vlgmr.msra.gmra.mxu0 %vm469_vm0, %v1331_v29 }
 0x505   : > { %v1402_v31 = vpop.f32.mrf.mxu0 }
 0x506   : > { %v1403_v32 = vadd.f32 %v1402_v31, %v1340_v47 }
 0x507   : > { %v1647_v33 = vpop.f32.mrf.mxu0 }
 0x508   : > { %1408 = vst [vmem:[%s183_s20] sm:$0xff] %v1403_v32 }
 0x509   : > { %v1405_v36 = vpop.f32.mrf.mxu0 }
 0x50b   : > { %v1648_v37 = vpop.f32.mrf.mxu0 }
 0x50c PF: > { %s14_s12 = sadd.s32 1, %s1787_s12  }
 0x50d   : > { %p11_p1 = scmp.ge.s32.totalorder %s14_s12, 4  }
 0x50f   :  { %13 = sbr.rel (!%p11_p1) target bundleno = 1 (0x1), region = 68 }
 0x514   :  { %1428 = vsyncpa [#allocation3], 1 }
 0x515   :  { %1430 = vsyncpa [#allocation3 + $0x1], 1 }

</bundles_post_ra>
